<compile_context>
chip_gen: v7x
topology: tpu7x:2x2x1
jax: 0.10.0
libtpu: 0.0.40
codegen_flags: <defaults>
</compile_context>

<pallas_src>
import jax
import jax.numpy as jnp
from jax.experimental import pallas as pl
from jax.experimental.pallas import tpu as pltpu

_LANES = 512  # lane-dense slab width (large multiple of 128)


def _affine_kernel(w_ref, b_ref, x_ref, o_ref):
    # w_ref / b_ref: (1, 1) float32 scalars in SMEM.
    # x_ref / o_ref: the current VMEM tile (1-D or 2-D, same shape).
    w = w_ref[0, 0]
    b = b_ref[0, 0]
    o_ref[...] = (x_ref[...] * w + b).astype(o_ref.dtype)


def _round_up(v, m):
    return ((v + m - 1) // m) * m


def _default_tile_rows():
    """Rows per (tile_rows, 512) f32 block: 2 MiB on v5*/unknown, 4 MiB on v6e/v7x."""
    try:
        kind = jax.devices()[0].device_kind.lower()
    except Exception:
        kind = ""
    if "v6" in kind or "v7" in kind:
        # 4 MiB block -> 16 MiB live (double-buffered in+out), under the
        # 32 MiB scoped-VMEM default on v6e and v7x.
        return 2048
    # v5e: 16 MiB scoped-VMEM default -> keep 2 MiB blocks (8 MiB live).
    return 1024


def _call_affine(arg, w_s, b_s, block_shape, index_map, grid):
    """pallas_call wrapper shared by the 2-D slab path and the 1-D ragged path."""
    n_elems = arg.size
    itemsize = jnp.dtype(arg.dtype).itemsize
    return pl.pallas_call(
        _affine_kernel,
        out_shape=jax.ShapeDtypeStruct(arg.shape, arg.dtype),
        grid_spec=pl.GridSpec(
            grid=grid,
            in_specs=[
                pl.BlockSpec(memory_space=pltpu.SMEM),  # weight scalar
                pl.BlockSpec(memory_space=pltpu.SMEM),  # bias scalar
                pl.BlockSpec(block_shape, index_map),   # x tile (auto-pipelined)
            ],
            out_specs=pl.BlockSpec(block_shape, index_map),
        ),
        compiler_params=pltpu.CompilerParams(
            dimension_semantics=("parallel",),  # independent blocks -> multi-core OK
        ),
        cost_estimate=pl.CostEstimate(
            flops=2 * n_elems,
            transcendentals=0,
            bytes_accessed=2 * n_elems * itemsize,
        ),
    )(w_s, b_s, arg)


def linear_regression_forward(x, weight, bias, *, tile_rows=None,
                              min_pallas_elems=256 * 1024):
    """Forward pass of torch.nn.Linear(1, 1).

    x:      (N, 1)
    weight: (1, 1)   (out_features, in_features)
    bias:   (1,)
    returns (N, 1)
    """
    n, f = x.shape
    assert f == 1 and weight.shape == (1, 1) and bias.shape == (1,)
    dtype = x.dtype

    # Small inputs: a single fused XLA elementwise op beats any pallas_call
    # fixed overhead (per-call setup, grid-step cost).
    if n < min_pallas_elems:
        return (x * weight[0, 0] + bias[0]).astype(dtype)

    itemsize = jnp.dtype(dtype).itemsize
    sub = 8 * max(1, 4 // itemsize)  # sublane granule: 8 (f32), 16 (bf16), 32 (i8)

    if tile_rows is None:
        tile_rows = _default_tile_rows()
    tile_rows = max(sub, (int(tile_rows) // sub) * sub)

    w_s = weight.reshape(1, 1).astype(jnp.float32)
    b_s = bias.reshape(1, 1).astype(jnp.float32)

    flat = x.reshape(n)  # (N, 1) -> (N,): bitcast, no data movement

    if n % (_LANES * sub) == 0:
        # Zero-copy lane-dense 2-D slab: (N,) viewed as (rows, 512).
        rows = n // _LANES
        slab = flat.reshape(rows, _LANES)         # bitcast, no copy
        tr = min(tile_rows, rows)                 # both multiples of `sub`
        grid = (pl.cdiv(rows, tr),)
        out = _call_affine(slab, w_s, b_s, (tr, _LANES), lambda i: (i, 0), grid)
    else:
        # Ragged N: run directly on the flat array with 1-D blocks.  Pallas
        # masks the out-of-bounds tail of the last block, so no jnp.pad on the
        # input and no [:N] slice on the output are needed.
        blk_granule = 128 * sub                   # full-vreg-aligned block granule
        block = min(tile_rows * _LANES, _round_up(n, blk_granule))
        block = _round_up(block, blk_granule)
        grid = (pl.cdiv(n, block),)
        out = _call_affine(flat, w_s, b_s, (block,), lambda i: (i,), grid)

    return out.reshape(n, 1)  # bitcast back to the (N, 1) PyTorch layout


if __name__ == "__main__":
    key = jax.random.PRNGKey(0)
    kw, kb, k1, k2, k3, k4, k5 = jax.random.split(key, 7)

    # nn.Linear(1, 1) init: fan_in = 1 -> U(-1, 1).
    weight = jax.random.uniform(kw, (1, 1), jnp.float32, minval=-1.0, maxval=1.0)
    bias = jax.random.uniform(kb, (1,), jnp.float32, minval=-1.0, maxval=1.0)

    def check(x, out, name):
        ref = x @ weight.T + bias
        assert out.shape == x.shape, f"shape mismatch: {name}"
        assert jnp.allclose(out, ref, atol=1e-6), f"value mismatch: {name}"

    # 1) Tiny input -> XLA fallback path.
    x1 = jax.random.normal(k1, (8, 1), jnp.float32)
    out1 = jax.block_until_ready(linear_regression_forward(x1, weight, bias))
    check(x1, out1, "N=8 fallback")

    # 2) Aligned N -> zero-copy 2-D lane-dense slab path, 2 grid steps.
    x2 = jax.random.normal(k2, (8192, 1), jnp.float32)
    out2 = jax.block_until_ready(
        linear_regression_forward(x2, weight, bias, tile_rows=8, min_pallas_elems=0))
    check(x2, out2, "N=8192 slab")

    # 3) Ragged N -> 1-D path, 3 grid steps, masked tail in the last block.
    x3 = jax.random.normal(k3, (10000, 1), jnp.float32)
    out3 = jax.block_until_ready(
        linear_regression_forward(x3, weight, bias, tile_rows=8, min_pallas_elems=0))
    check(x3, out3, "N=10000 ragged multi-block")

    # 4) Ragged N smaller than one auto-sized block -> single masked block.
    x4 = jax.random.normal(k4, (5000, 1), jnp.float32)
    out4 = jax.block_until_ready(
        linear_regression_forward(x4, weight, bias, min_pallas_elems=0))
    check(x4, out4, "N=5000 single ragged block")

    # 5) Default configuration end-to-end (auto tile, auto path selection).
    x5 = jax.random.normal(k5, (256 * 1024, 1), jnp.float32)
    out5 = jax.block_until_ready(linear_regression_forward(x5, weight, bias))
    check(x5, out5, "N=262144 default path")

    print("KERNEL_OK")
</pallas_src>

<mosaic_0001>
module attributes {stable_mosaic.version = 11 : i64} {
  func.func @_affine_kernel(%arg0: i32, %arg1: memref<1x1xf32, #tpu.memory_space<smem>>, %arg2: memref<1x1xf32, #tpu.memory_space<smem>>, %arg3: memref<8x512xf32, #tpu.memory_space<vmem>>, %arg4: memref<8x512xf32, #tpu.memory_space<vmem>>) attributes {dimension_semantics = [#tpu.dimension_semantics<parallel>], iteration_bounds = array<i64: 2>, scalar_prefetch = 0 : i64, scratch_operands = 0 : i64, tpu.core_type = #tpu.core_type<tc>, window_params = [{transform_indices = @transform_0, window_bounds = array<i64: 1, 1>}, {transform_indices = @transform_1, window_bounds = array<i64: 1, 1>}, {transform_indices = @transform_2, window_bounds = array<i64: 8, 512>}, {transform_indices = @transform_3, window_bounds = array<i64: 8, 512>}]} {
    %c0 = arith.constant 0 : index
    %c0_0 = arith.constant 0 : index
    %0 = memref.load %arg1[%c0, %c0_0] : memref<1x1xf32, #tpu.memory_space<smem>>
    %c0_1 = arith.constant 0 : index
    %c0_2 = arith.constant 0 : index
    %1 = memref.load %arg2[%c0_1, %c0_2] : memref<1x1xf32, #tpu.memory_space<smem>>
    %c0_3 = arith.constant 0 : index
    %c0_4 = arith.constant 0 : index
    %2 = vector.load %arg3[%c0_3, %c0_4] : memref<8x512xf32, #tpu.memory_space<vmem>>, vector<8x512xf32>
    %3 = vector.broadcast %0 : f32 to vector<8x512xf32>
    %4 = arith.mulf %2, %3 : vector<8x512xf32>
    %5 = vector.broadcast %1 : f32 to vector<8x512xf32>
    %6 = arith.addf %4, %5 : vector<8x512xf32>
    %c0_5 = arith.constant 0 : index
    %c0_6 = arith.constant 0 : index
    %7 = vector.load %arg4[%c0_5, %c0_6] : memref<8x512xf32, #tpu.memory_space<vmem>>, vector<8x512xf32>
    tpu.vector_store %arg4[%c0_5, %c0_6], %6 {strides = array<i32>} : memref<8x512xf32, #tpu.memory_space<vmem>>, vector<8x512xf32>,
    return
  }
  func.func @transform_0(%arg0: i32) -> (i32, i32) {
    %c0_i32 = arith.constant 0 : i32
    %c0_i32_0 = arith.constant 0 : i32
    %c0_i32_1 = arith.constant 0 : i32
    return %c0_i32, %c0_i32_0 : i32, i32
  }
  func.func @transform_1(%arg0: i32) -> (i32, i32) {
    %c0_i32 = arith.constant 0 : i32
    %c0_i32_0 = arith.constant 0 : i32
    %c0_i32_1 = arith.constant 0 : i32
    return %c0_i32, %c0_i32_0 : i32, i32
  }
  func.func @transform_2(%arg0: i32) -> (i32, i32) {
    %c0_i32 = arith.constant 0 : i32
    %c0_i32_0 = arith.constant 0 : i32
    return %arg0, %c0_i32 : i32, i32
  }
  func.func @transform_3(%arg0: i32) -> (i32, i32) {
    %c0_i32 = arith.constant 0 : i32
    %c0_i32_0 = arith.constant 0 : i32
    return %arg0, %c0_i32 : i32, i32
  }
}

</mosaic_0001>

<bundles_post_ra>
// kernel: tpu_custom_call.1
= control target key start
LH: loop header
LB: loop body
LE: loop exit
PB: predicated region body
PF: predicated region fallthrough
CT: control target
= control target key end

     0   :  { %s643_s0 = inlined_call_operand.<no memory space> [shape: f32[1,1], index: 0, kind: input, shape index: {}]   ;;  %s644_s1 = inlined_call_operand.<no memory space> [shape: f32[1,1], index: 1, kind: input, shape index: {}]   ;;  %s645_s2 = inlined_call_operand.hbm [shape: f32[16,512], index: 2, kind: input, shape index: {}]   ;;  %s646_s3 = inlined_call_operand.hbm [shape: f32[16,512], index: 3, kind: output, shape index: {}]  }
   0x1   :  { %8 = sst [smem:[#allocation2]] %s643_s0 }
   0x2   :  { %9 = sst [smem:[#allocation3]] %s644_s1 }
   0x3   :  { %10 = vsyncpa [#allocation5], 0 }
   0x4   :  { %12 = vsyncpa [#allocation5 + $0x1], 0 }
   0x5   :  { %13 = vsyncpa [#allocation6], 0 }
   0x6   :  { %15 = vsyncpa [#allocation6 + $0x1], 0  ;;  %s482_s16 = smov 0   ;;  %s484_s17 = smov 0  }
   0x7   :  { %s486_s18 = smov 0   ;;  %s488_s19 = smov 0  }
   0x8 LB: > { %s503_s0 = sadd.s32 4294967295, %s452_s19   ;;  %s294_s1 = sadd.s32 4294967294, %s452_s19   ;;  %s452_s19 = sphi %s488_s19, %s661_s19   ;;  %s448_s18 = sphi %s486_s18, %s660_s18   ;;  %s444_s17 = sphi %s484_s17, %s659_s17   ;;  %s440_s16 = sphi %s482_s16, %s658_s16  }
   0x9   : > { %s507_s20 = sadd.s32 1, %s452_s19   ;;  %s70_s21 = sadd.s32 1, %s448_s18 }
   0xa   : > { %s67_s22 = ssub.s32 %s452_s19, %s507_s20  ;;  %p77_p0 = scmp.ne.s32.totalorder %s448_s18, %s444_s17 }
   0xb   : > { %p68_p1 = scmp.eq.s32.totalorder %s67_s22, 0  ;;  %p78_p2 = scmp.eq.s32.totalorder %s452_s19, 0 }
   0xc   : > { %p83_p3 = scmp.ne.s32.totalorder %s444_s17, %s440_s16  ;;  %p84_p4 = scmp.eq.s32.totalorder %s503_s0, 0 }
   0xd   : > { %s519_s23 = scalar_select %p68_p1, %s448_s18, %s70_s21  }
   0xe   : > { %p521_p5 = por %p78_p2, %p77_p0  ;;  %p525_p6 = por %p84_p4, %p83_p3 }
   0xf   : > { %p107_p7 = scmp.eq.s32.totalorder %s503_s0, 1  ;;  %p113_p8 = scmp.eq.s32.totalorder %s294_s1, 1 }
  0x10   : > { %p322_p10 = scmp.lt.s32.totalorder %s452_s19, 2  ;;  %s139_s28 = sand.u32 1, %s448_s18  }
  0x11   : > { %p532_p11 = por %p107_p7, %p77_p0  ;;  %p536_p12 = por %p113_p8, %p83_p3 }
  0x12   : > { %s308_s29 = sshll.u32 %s452_s19, 9  ;;  %s297_s30 = sshll.u32 %s139_s28, 5 }
  0x13   : > { %s650_s26 = scalar_select %p532_p11, 1, 0 }
  0x14   : > { %s651_s27 = scalar_select %p536_p12, 1, 0 }
  0x15   : > { %s545_s6 = scalar_lea.hbm %s645_s2, %s308_s29  ;;  %s143_s7 = scalar_lea.vmem [#allocation4], %s297_s30 }
  0x16   : > { %s151_s8 = sshll.u32 %s143_s7, 4  ;;  %p549_p13 = pnand %p322_p10, %p521_p5  ;;  %s553_s8 = int_to_ptr.vmem [resolvable:$true] %s151_s8 }
  0x17   : > { %s140_s10 = scalar_lea.sflag [#allocation5], %s139_s28  ;;  %s356_s11 = scalar_lea.hbm %s545_s6, 512 }
  0x18   : > { %p357_p2 = scmp.ne.s32.totalorder %s545_s6, %s356_s11  ;;  %p358_p3 = pneg %p549_p13 }
  0x19   : > { %s361_s14 = scalar_lea.hbm %s645_s2, 1024  ;;  %p362_p5 = scmp.lt.u32.totalorder %s545_s6, %s645_s2 }
  0x1a   : > { %p359_p4 = pnand %p358_p3, %p357_p2  ;;  %p363_p8 = scmp.lt.u32.totalorder %s361_s14, %s356_s11 }
  0x1b   : > { %p365_p9 = scmp.lt.u32.totalorder %s356_s11, %s545_s6 }
  0x1c   : > { %p360_p7 = pneg %p359_p4  ;;  %p364_p10 = por %p363_p8, %p362_p5 }
  0x1e   : > { %p366_p0 = por %p365_p9, %p364_p10 }
  0x20   : > { %p367_p1 = pnand %p366_p0, %p360_p7 }
  0x22   : > { %370 = shalt.err (!%p367_p1)
}
  0x23   : > { %s371_s21 = scalar_lea.vmem %s553_s8, 512  ;;  %s454_s22 = smov [#allocation4]  }
  0x24   : > { %p372_p2 = scmp.ne.s32.totalorder %s553_s8, %s371_s21  ;;  %s376_s24 = sshll.u32 %s454_s22, 4  ;;  %s377_s24 = int_to_ptr.vmem [resolvable:$false] %s376_s24 }
  0x25   : > { %s378_s28 = scalar_lea.vmem %s377_s24, 1024  ;;  %p379_p11 = scmp.lt.s32.totalorder %s553_s8, %s377_s24 }
  0x26   : > { %p374_p4 = pnand %p372_p2, %p358_p3  ;;  %p380_p5 = scmp.lt.s32.totalorder %s378_s28, %s371_s21 }
  0x28   : > { %p375_p12 = pneg %p374_p4  ;;  %p381_p8 = por %p380_p5, %p379_p11 }
  0x2a   : > { %p382_p9 = pnand %p381_p8, %p375_p12 }
  0x2c   : > { %385 = shalt.err (!%p382_p9)
}
  0x2d   : > { %317 = dma.hbm_to_vmem [thread:$0]  (!%p549_p13), %s545_s6, 512, %s553_s8, %s140_s10  }
  0x2e   : > { %p653_p0 = scmp.lt.s32.totalorder %s452_s19, 3  ;;  %p654_p1 = scmp.ge.s32.totalorder %s452_s19, 1 }
  0x30   : > { %p157_p3 = pnand %p654_p1, %p653_p0 }
  0x31   : > { %s587_s29 = sand.u32 (!%p157_p3), 1, %s444_s17  }
  0x32   : > { %160 = sbr.rel (%p157_p3) target bundleno = 85 (0x55), region = 32  ;;  %s301_s30 = sshll.u32 (!%p157_p3), %s587_s29, 5 }
  0x33   : > { %s163_s4 = scalar_lea.sflag (!%p157_p3), [#allocation5], %s587_s29  ;;  %s166_s5 = scalar_lea.vmem (!%p157_p3), [#allocation4], %s301_s30 }
  0x39   : > { %431 = dma.done.wait (%p525_p6), %s163_s4, 512  }
  0x3a   : > { %433 = vsyncadd (%p525_p6), %s163_s4, 4294966784  ;;  %s189_s6 = sld [smem:[#allocation2]]  ;;  %v191_v0 = vld [vmem:[%s166_s5] sm:$0xff]  ;;  %v192_v3 = vld [vmem:[%s166_s5 + $0x8] sm:$0xff]  ;;  %s188_s8 = scalar_lea.vmem [#allocation7], %s301_s30 }
  0x3b   : > { %s190_s7 = sld [smem:[#allocation3]]  ;;  %s224_s9 = sshll.u32 %s188_s8, 4  ;;  %v193_v6 = vld [vmem:[%s166_s5 + $0x10] sm:$0xff]  ;;  %v194_v7 = vld [vmem:[%s166_s5 + $0x18] sm:$0xff]  ;;  %s596_s9 = int_to_ptr.vmem [resolvable:$true] %s224_s9 }
  0x3c   : > { %s309_s10 = sshll.u32 %s503_s0, 9  ;;  %s210_s0 = scalar_lea.sflag [#allocation6], %s587_s29 }
  0x3d   : > { %s601_s12 = scalar_lea.hbm %s646_s3, %s309_s10  ;;  %s386_s13 = scalar_lea.vmem %s596_s9, 512 }
  0x3e   : > { %p387_p6 = scmp.ne.s32.totalorder %s596_s9, %s386_s13  ;;  %p655_p11 = scmp.ne.s32.totalorder %s650_s26, 0 }
  0x3f   : > { %s455_s14 = smov [#allocation7]  }
  0x40   : > { %v195_v1 = vstv %s189_s6  ;;  %p388_p12 = pnand %p387_p6, %p655_p11  ;;  %s390_s15 = sshll.u32 %s455_s14, 4  ;;  %s391_s15 = int_to_ptr.vmem [resolvable:$false] %s390_s15 }
  0x41   : > { %v200_v2 = vstv %s190_s7  ;;  %v196_v4 = vmul.f32 %v195_v1, %v191_v0  ;;  %v197_v5 = vmul.f32 %v195_v1, %v192_v3  ;;  %v198_v8 = vmul.f32 %v195_v1, %v193_v6  ;;  %s392_s1 = scalar_lea.vmem %s391_s15, 1024  ;;  %p393_p7 = scmp.lt.s32.totalorder %s596_s9, %s391_s15 }
  0x42   : > { %v199_v9 = vmul.f32 %v195_v1, %v194_v7  ;;  %p389_p13 = pneg %p388_p12  ;;  %p394_p10 = scmp.lt.s32.totalorder %s392_s1, %s386_s13 }
  0x43   : > { %v201_v10 = vadd.f32 %v200_v2, %v196_v4  ;;  %v202_v11 = vadd.f32 %v200_v2, %v197_v5  ;;  %v203_v12 = vadd.f32 %v200_v2, %v198_v8 }
  0x44   : > { %v204_v13 = vadd.f32 %v200_v2, %v199_v9  ;;  %p395_p2 = por %p394_p10, %p393_p7 }
  0x45   : > { %205 = vst [vmem:[%s188_s8] sm:$0xff] %v201_v10  ;;  %206 = vst [vmem:[%s188_s8 + $0x8] sm:$0xff] %v202_v11 }
  0x46   : > { %207 = vst [vmem:[%s188_s8 + $0x10] sm:$0xff] %v203_v12  ;;  %208 = vst [vmem:[%s188_s8 + $0x18] sm:$0xff] %v204_v13  ;;  %p396_p4 = pnand %p395_p2, %p389_p13 }
  0x48   : > { %399 = shalt.err (!%p396_p4)
}
  0x49   : > { %s400_s21 = scalar_lea.hbm %s601_s12, 512  ;;  %s404_s28 = scalar_lea.hbm %s646_s3, 1024 }
  0x4a   : > { %p401_p5 = scmp.ne.s32.totalorder %s601_s12, %s400_s21  ;;  %p405_p0 = scmp.lt.u32.totalorder %s601_s12, %s646_s3 }
  0x4b   : > { %p406_p1 = scmp.lt.u32.totalorder %s404_s28, %s400_s21  ;;  %p408_p6 = scmp.lt.u32.totalorder %s400_s21, %s601_s12 }
  0x4c   : > { %p402_p8 = pnand %p401_p5, %p655_p11 }
  0x4d   : > { %p407_p3 = por %p406_p1, %p405_p0 }
  0x4e   : > { %p403_p9 = pneg %p402_p8 }
  0x4f   : > { %p409_p12 = por %p408_p6, %p407_p3 }
  0x51   : > { %p410_p13 = pnand %p409_p12, %p403_p9 }
  0x53   : > { %413 = shalt.err (!%p410_p13)
}
  0x54   : > { %312 = dma.vmem_to_hbm [thread:$0]  (%p655_p11), %s596_s9, 512, %s601_s12, %s210_s0  }
  0x55 PF: > { %s236_s4 = sand.u32 1, %s440_s16   ;;  %p656_p7 = scmp.ne.s32.totalorder %s651_s27, 0 }
  0x56   : > { %p657_p10 = scmp.ge.s32.totalorder %s452_s19, 2  ;;  %s237_s5 = scalar_lea.sflag [#allocation6], %s236_s4 }
  0x58   : > { %p319_p2 = pnand %p657_p10, %p656_p7 }
  0x5a   : > { %435 = dma.done.wait (!%p319_p2), %s237_s5, 512  }
  0x5b   : > { %437 = vsyncadd (!%p319_p2), %s237_s5, 4294966784  ;;  %p18_p4 = scmp.ge.s32.totalorder %s507_s20, 4   ;;  %s658_s16 = smov %s444_s17 }
  0x5c   : > { %s659_s17 = smov %s448_s18  ;;  %s660_s18 = smov %s519_s23 }
  0x5d   : > { %s661_s19 = smov %s507_s20  ;;  %20 = sbr.rel (!%p18_p4) target bundleno = 8 (0x8), region = 77 }
  0x64   :  { %242 = vsyncpa [#allocation5], 1 }
  0x65   :  { %244 = vsyncpa [#allocation5 + $0x1], 1 }
  0x66   :  { %245 = vsyncpa [#allocation6], 1 }
  0x67   :  { %247 = vsyncpa [#allocation6 + $0x1], 1 }

</bundles_post_ra>
